<compile_context>
chip_gen: v7x
topology: tpu7x:2x2x1
jax: 0.10.0
libtpu: 0.0.40
codegen_flags: <defaults>
</compile_context>

<pallas_src>
import jax
import jax.numpy as jnp
from jax.experimental import pallas as pl
from jax.experimental.pallas import tpu as pltpu


def _generator_kernel(z_ref, w1_ref, b1_ref, w2_ref, b2_ref, w3_ref, b3_ref, o_ref):
    # z : (bt, input_dim)  f32          w1: (input_dim, 32)   mxu_dtype
    # b1: (1, 32)          f32          w2: (32, 64)          mxu_dtype
    # b2: (1, 64)          f32          w3: (64, output_dim)  mxu_dtype
    # b3: (1, output_dim)  f32          o : (bt, output_dim)  f32
    mxu_dtype = w1_ref.dtype

    z = z_ref[...].astype(mxu_dtype)  # cast only the MXU operand; DMA stays f32

    h1 = jnp.dot(z, w1_ref[...], preferred_element_type=jnp.float32)
    h1 = jnp.maximum(h1 + b1_ref[...], 0.0)          # f32 elementwise

    h2 = jnp.dot(h1.astype(mxu_dtype), w2_ref[...], preferred_element_type=jnp.float32)
    h2 = jnp.maximum(h2 + b2_ref[...], 0.0)          # f32 elementwise

    h3 = jnp.dot(h2.astype(mxu_dtype), w3_ref[...], preferred_element_type=jnp.float32)
    o_ref[...] = h3 + b3_ref[...]


def _pick_batch_tile(B, batch_tile):
    """Batch rows sit on the sublane axis -> tile only needs to be a multiple of 8."""
    bt = max(8, (int(batch_tile) // 8) * 8)
    # Never larger than the 8-rounded-up batch (avoid an oversized single block).
    bt = max(8, min(bt, ((B + 7) // 8) * 8))
    # For large batches keep >= 2 grid steps so the "parallel" axis can shard
    # across v7x's two TensorCores (no-op on single-TC v5e/v6e).
    if B >= 1024 and (B + bt - 1) // bt < 2:
        half = ((B + 1) // 2 + 127) // 128 * 128
        bt = max(128, min(bt, half))
    return bt


def generator_forward(z, params, *, batch_tile=4096, mxu_dtype=jnp.bfloat16):
    """Run the Generator MLP as a single Pallas kernel.

    z:      (B, input_dim) float32 (PyTorch layout, consumed directly)
    params: PyTorch-layout weights: w (out_features, in_features), b (out_features,)
    Returns (B, output_dim) float32 (PyTorch layout, produced directly).
    """
    B, input_dim = z.shape
    output_dim = params["w3"].shape[0]

    bt = _pick_batch_tile(B, batch_tile)
    grid = (pl.cdiv(B, bt),)

    # One-time, few-KiB layout/precision prep for the *resident* weights
    # (this is not a per-sample HBM pass).  Transposing to (in, out) folds
    # torch's x @ W.T into a plain (bt,K)@(K,N) MXU matmul.
    w1 = params["w1"].T.astype(mxu_dtype)
    w2 = params["w2"].T.astype(mxu_dtype)
    w3 = params["w3"].T.astype(mxu_dtype)
    b1 = params["b1"].reshape(1, -1).astype(jnp.float32)
    b2 = params["b2"].reshape(1, -1).astype(jnp.float32)
    b3 = params["b3"].reshape(1, -1).astype(jnp.float32)

    def resident(shape):
        # Constant index_map: fetched once, stays in VMEM for the whole grid.
        return pl.BlockSpec(shape, lambda i: (0, 0))

    in_specs = [
        pl.BlockSpec((bt, input_dim), lambda i: (i, 0)),  # z tile: contiguous DMA
        resident(w1.shape), resident(b1.shape),
        resident(w2.shape), resident(b2.shape),
        resident(w3.shape), resident(b3.shape),
    ]
    out_spec = pl.BlockSpec((bt, output_dim), lambda i: (i, 0))

    return pl.pallas_call(
        _generator_kernel,
        out_shape=jax.ShapeDtypeStruct((B, output_dim), jnp.float32),
        grid_spec=pl.GridSpec(grid=grid, in_specs=in_specs, out_specs=out_spec),
        compiler_params=pltpu.CompilerParams(
            dimension_semantics=("parallel",),
        ),
    )(z.astype(jnp.float32), w1, b1, w2, b2, w3, b3)


def init_generator_params(key, input_dim, output_dim):
    """nn.Linear-style init, PyTorch-native layout: W (out, in), b (out,)."""
    def linear(k, fan_in, fan_out):
        kw, kb = jax.random.split(k)
        bound = 1.0 / jnp.sqrt(fan_in)
        w = jax.random.uniform(kw, (fan_out, fan_in), jnp.float32, -bound, bound)
        b = jax.random.uniform(kb, (fan_out,), jnp.float32, -bound, bound)
        return w, b

    k1, k2, k3 = jax.random.split(key, 3)
    w1, b1 = linear(k1, input_dim, 32)
    w2, b2 = linear(k2, 32, 64)
    w3, b3 = linear(k3, 64, output_dim)
    return {"w1": w1, "b1": b1, "w2": w2, "b2": b2, "w3": w3, "b3": b3}


def generator_reference(z, p):
    """Pure-JAX reference with torch semantics (x @ W.T + b)."""
    h1 = jnp.maximum(z @ p["w1"].T + p["b1"], 0.0)
    h2 = jnp.maximum(h1 @ p["w2"].T + p["b2"], 0.0)
    return h2 @ p["w3"].T + p["b3"]


if __name__ == "__main__":
    key = jax.random.PRNGKey(0)
    k_param, k_z = jax.random.split(key)

    batch = 8
    input_dim = 16   # latent dim
    output_dim = 8

    params = init_generator_params(k_param, input_dim, output_dim)
    z = jax.random.normal(k_z, (batch, input_dim), jnp.float32)
    ref = generator_reference(z, params)

    # Default path: bf16 MXU operands, f32 accumulation + f32 elementwise.
    out = jax.block_until_ready(generator_forward(z, params))
    assert out.shape == (batch, output_dim)
    assert jnp.allclose(out, ref, atol=2e-2, rtol=2e-2), "mismatch vs reference (bf16 MXU)"

    # f32-operand path matches the default-precision JAX reference tightly.
    out_f32 = jax.block_until_ready(generator_forward(z, params, mxu_dtype=jnp.float32))
    assert jnp.allclose(out_f32, ref, atol=1e-4, rtol=1e-4), "mismatch vs reference (f32 MXU)"

    # Multi-tile grid with a masked partial last block: no pad, no output slice.
    big_batch = 1000
    z_big = jax.random.normal(jax.random.PRNGKey(1), (big_batch, input_dim), jnp.float32)
    ref_big = generator_reference(z_big, params)
    out_big = jax.block_until_ready(generator_forward(z_big, params, batch_tile=512))
    assert out_big.shape == (big_batch, output_dim)
    assert jnp.allclose(out_big, ref_big, atol=2e-2, rtol=2e-2), "mismatch vs reference (big)"

    print("KERNEL_OK")
</pallas_src>

<mosaic_0001>
module attributes {stable_mosaic.version = 11 : i64} {
  func.func @_generator_kernel(%arg0: i32, %arg1: memref<8x16xf32, #tpu.memory_space<vmem>>, %arg2: memref<16x32xbf16, #tpu.memory_space<vmem>>, %arg3: memref<1x32xf32, #tpu.memory_space<vmem>>, %arg4: memref<32x64xbf16, #tpu.memory_space<vmem>>, %arg5: memref<1x64xf32, #tpu.memory_space<vmem>>, %arg6: memref<64x8xbf16, #tpu.memory_space<vmem>>, %arg7: memref<1x8xf32, #tpu.memory_space<vmem>>, %arg8: memref<8x8xf32, #tpu.memory_space<vmem>>) attributes {dimension_semantics = [#tpu.dimension_semantics<parallel>], iteration_bounds = array<i64: 1>, scalar_prefetch = 0 : i64, scratch_operands = 0 : i64, tpu.core_type = #tpu.core_type<tc>, window_params = [{transform_indices = @transform_0, window_bounds = array<i64: 8, 16>}, {pipeline_mode = #tpu.pipeline_mode<synchronous>, transform_indices = @transform_1, window_bounds = array<i64: 16, 32>}, {pipeline_mode = #tpu.pipeline_mode<synchronous>, transform_indices = @transform_2, window_bounds = array<i64: 1, 32>}, {pipeline_mode = #tpu.pipeline_mode<synchronous>, transform_indices = @transform_3, window_bounds = array<i64: 32, 64>}, {pipeline_mode = #tpu.pipeline_mode<synchronous>, transform_indices = @transform_4, window_bounds = array<i64: 1, 64>}, {pipeline_mode = #tpu.pipeline_mode<synchronous>, transform_indices = @transform_5, window_bounds = array<i64: 64, 8>}, {pipeline_mode = #tpu.pipeline_mode<synchronous>, transform_indices = @transform_6, window_bounds = array<i64: 1, 8>}, {transform_indices = @transform_7, window_bounds = array<i64: 8, 8>}]} {
    %c0 = arith.constant 0 : index
    %c0_0 = arith.constant 0 : index
    %0 = vector.load %arg1[%c0, %c0_0] : memref<8x16xf32, #tpu.memory_space<vmem>>, vector<8x16xf32>
    %1 = arith.truncf %0 : vector<8x16xf32> to vector<8x16xbf16>
    %c0_1 = arith.constant 0 : index
    %c0_2 = arith.constant 0 : index
    %2 = vector.load %arg2[%c0_1, %c0_2] : memref<16x32xbf16, #tpu.memory_space<vmem>>, vector<16x32xbf16>
    %cst = arith.constant dense<0.000000e+00> : vector<8x32xf32>
    %3 = tpu.matmul %1, %2, %cst {dimension_numbers = #tpu.dot_dimension_numbers<[1], [0], [0], [1], [0, 0, 1, 1], [], []>} : vector<8x16xbf16>, vector<16x32xbf16>, vector<8x32xf32> -> vector<8x32xf32>
    %c0_3 = arith.constant 0 : index
    %c0_4 = arith.constant 0 : index
    %4 = vector.load %arg3[%c0_3, %c0_4] : memref<1x32xf32, #tpu.memory_space<vmem>>, vector<1x32xf32>
    %5 = vector.broadcast %4 : vector<1x32xf32> to vector<8x32xf32>
    %6 = arith.addf %3, %5 : vector<8x32xf32>
    %cst_5 = arith.constant 0.000000e+00 : f32
    %7 = vector.broadcast %cst_5 : f32 to vector<8x32xf32>
    %8 = arith.maximumf %6, %7 : vector<8x32xf32>
    %9 = arith.truncf %8 : vector<8x32xf32> to vector<8x32xbf16>
    %c0_6 = arith.constant 0 : index
    %c0_7 = arith.constant 0 : index
    %10 = vector.load %arg4[%c0_6, %c0_7] : memref<32x64xbf16, #tpu.memory_space<vmem>>, vector<32x64xbf16>
    %cst_8 = arith.constant dense<0.000000e+00> : vector<8x64xf32>
    %11 = tpu.matmul %9, %10, %cst_8 {dimension_numbers = #tpu.dot_dimension_numbers<[1], [0], [0], [1], [0, 0, 1, 1], [], []>} : vector<8x32xbf16>, vector<32x64xbf16>, vector<8x64xf32> -> vector<8x64xf32>
    %c0_9 = arith.constant 0 : index
    %c0_10 = arith.constant 0 : index
    %12 = vector.load %arg5[%c0_9, %c0_10] : memref<1x64xf32, #tpu.memory_space<vmem>>, vector<1x64xf32>
    %13 = vector.broadcast %12 : vector<1x64xf32> to vector<8x64xf32>
    %14 = arith.addf %11, %13 : vector<8x64xf32>
    %cst_11 = arith.constant 0.000000e+00 : f32
    %15 = vector.broadcast %cst_11 : f32 to vector<8x64xf32>
    %16 = arith.maximumf %14, %15 : vector<8x64xf32>
    %17 = arith.truncf %16 : vector<8x64xf32> to vector<8x64xbf16>
    %c0_12 = arith.constant 0 : index
    %c0_13 = arith.constant 0 : index
    %18 = vector.load %arg6[%c0_12, %c0_13] : memref<64x8xbf16, #tpu.memory_space<vmem>>, vector<64x8xbf16>
    %cst_14 = arith.constant dense<0.000000e+00> : vector<8x8xf32>
    %19 = tpu.matmul %17, %18, %cst_14 {dimension_numbers = #tpu.dot_dimension_numbers<[1], [0], [0], [1], [0, 0, 1, 1], [], []>} : vector<8x64xbf16>, vector<64x8xbf16>, vector<8x8xf32> -> vector<8x8xf32>
    %c0_15 = arith.constant 0 : index
    %c0_16 = arith.constant 0 : index
    %20 = vector.load %arg7[%c0_15, %c0_16] : memref<1x8xf32, #tpu.memory_space<vmem>>, vector<1x8xf32>
    %21 = vector.broadcast %20 : vector<1x8xf32> to vector<8x8xf32>
    %22 = arith.addf %19, %21 : vector<8x8xf32>
    %c0_17 = arith.constant 0 : index
    %c0_18 = arith.constant 0 : index
    %23 = vector.load %arg8[%c0_17, %c0_18] : memref<8x8xf32, #tpu.memory_space<vmem>>, vector<8x8xf32>
    tpu.vector_store %arg8[%c0_17, %c0_18], %22 {strides = array<i32>} : memref<8x8xf32, #tpu.memory_space<vmem>>, vector<8x8xf32>,
    return
  }
  func.func @transform_0(%arg0: i32) -> (i32, i32) {
    %c0_i32 = arith.constant 0 : i32
    %c0_i32_0 = arith.constant 0 : i32
    return %arg0, %c0_i32 : i32, i32
  }
  func.func @transform_1(%arg0: i32) -> (i32, i32) {
    %c0_i32 = arith.constant 0 : i32
    %c0_i32_0 = arith.constant 0 : i32
    %c0_i32_1 = arith.constant 0 : i32
    return %c0_i32, %c0_i32_0 : i32, i32
  }
  func.func @transform_2(%arg0: i32) -> (i32, i32) {
    %c0_i32 = arith.constant 0 : i32
    %c0_i32_0 = arith.constant 0 : i32
    %c0_i32_1 = arith.constant 0 : i32
    return %c0_i32, %c0_i32_0 : i32, i32
  }
  func.func @transform_3(%arg0: i32) -> (i32, i32) {
    %c0_i32 = arith.constant 0 : i32
    %c0_i32_0 = arith.constant 0 : i32
    %c0_i32_1 = arith.constant 0 : i32
    return %c0_i32, %c0_i32_0 : i32, i32
  }
  func.func @transform_4(%arg0: i32) -> (i32, i32) {
    %c0_i32 = arith.constant 0 : i32
    %c0_i32_0 = arith.constant 0 : i32
    %c0_i32_1 = arith.constant 0 : i32
    return %c0_i32, %c0_i32_0 : i32, i32
  }
  func.func @transform_5(%arg0: i32) -> (i32, i32) {
    %c0_i32 = arith.constant 0 : i32
    %c0_i32_0 = arith.constant 0 : i32
    %c0_i32_1 = arith.constant 0 : i32
    return %c0_i32, %c0_i32_0 : i32, i32
  }
  func.func @transform_6(%arg0: i32) -> (i32, i32) {
    %c0_i32 = arith.constant 0 : i32
    %c0_i32_0 = arith.constant 0 : i32
    %c0_i32_1 = arith.constant 0 : i32
    return %c0_i32, %c0_i32_0 : i32, i32
  }
  func.func @transform_7(%arg0: i32) -> (i32, i32) {
    %c0_i32 = arith.constant 0 : i32
    %c0_i32_0 = arith.constant 0 : i32
    return %arg0, %c0_i32 : i32, i32
  }
}

</mosaic_0001>

<bundles_post_ra>
// kernel: tpu_custom_call.1
= control target key start
LH: loop header
LB: loop body
LE: loop exit
PB: predicated region body
PF: predicated region fallthrough
CT: control target
= control target key end

     0   :  { %v342_v1 = vmov 0.0   ;;  %vm343_vm0 = vmmov 0   ;;  %vm45_vm1 = vcmask 130048   ;;  %s430_s0 = inlined_call_operand.vmem [shape: f32[8,16], index: 0, kind: input, shape index: {}]   ;;  %s431_s1 = inlined_call_operand.vmem [shape: bf16[16,32], index: 1, kind: input, shape index: {}]   ;;  %s432_s2 = inlined_call_operand.vmem [shape: f32[1,32], index: 2, kind: input, shape index: {}]   ;;  %s433_s3 = inlined_call_operand.vmem [shape: bf16[32,64], index: 3, kind: input, shape index: {}]   ;;  %s434_s4 = inlined_call_operand.vmem [shape: f32[1,64], index: 4, kind: input, shape index: {}]   ;;  %s435_s5 = inlined_call_operand.vmem [shape: bf16[64,8], index: 5, kind: input, shape index: {}]   ;;  %s436_s6 = inlined_call_operand.vmem [shape: f32[1,8], index: 6, kind: input, shape index: {}]   ;;  %s437_s7 = inlined_call_operand.hbm [shape: f32[8,8], index: 7, kind: output, shape index: {}]  }
   0x1   :  { %v311_v0 = vld [vmem:[%s431_s1] sm:$0xff]   ;;  %282 = vmatprep.subr.bf16.mxu1 %v342_v1  ;;  %296 = vmatprep.subr.bf16.mxu0 %v342_v1 }
   0x2   :  { %v28_v2 = vld [vmem:[%s430_s0] sm:$0xff]  ;;  %283 = vmatpush3.bf16.msra.mxu1 %v311_v0  ;;  %284 = vmatprep.mubr.msk.bf16.mxu1 %vm343_vm0, %v342_v1 }
   0x3   :  { %v29_v3 = vpack.c.bf16 %v28_v2, %v28_v2  ;;  %v312_v4 = vld [vmem:[%s433_s3] sm:$0xff]   ;;  %288 = vmatprep.subr.bf16.mxu1 %v342_v1  ;;  %304 = vmatprep.mubr.msk.bf16.mxu0 %vm343_vm0, %v342_v1 }
   0x5   :  { %285 = vmatmul.mubr.msk.bf16.vlgmr.msra.gmra.mrb[0].mxu1 %vm45_vm1, %v29_v3 }
   0x6   :  { %289 = vmatpush3.bf16.msra.mxu1 %v312_v4  ;;  %292 = vmatprep.mubr.msk.bf16.mxu1 %vm343_vm0, %v342_v1 }
   0x7   :  { %12 = vsyncpa [#allocation3], 0  ;;  %290 = vmatprep.subr.bf16.mxu1 %v342_v1  ;;  %v313_v5 = vld [vmem:[%s433_s3 + $0x8] sm:$0xff]   ;;  %v314_v6 = vld [vmem:[%s435_s5] sm:$0xff]   ;;  %vm114_vm2 = vcmask 261120   ;;  %vm199_vm3 = vcmask 523264  }
   0x8   :  { %297 = vmatpush3.bf16.msra.mxu0 %v314_v6  ;;  %v315_v7 = vld [vmem:[%s435_s5 + $0x8] sm:$0xff]   ;;  %v259_v8 = vld [vmem:[%s432_s2] ss:$0 sm:$0xff]  ;;  %v316_v16 = vld [vmem:[%s435_s5 + $0x10] sm:$0xff]   ;;  %s344_s19 = smov [#allocation2]   ;;  %vm243_vm4 = vcmask 64512  }
   0x9   :  { %298 = vmatprep.subr.bf16.mxu0 %v342_v1  ;;  %v317_v17 = vld [vmem:[%s435_s5 + $0x18] sm:$0xff]   ;;  %v262_v18 = vld [vmem:[%s434_s4] ss:$0 sm:$0xff]  ;;  %s251_s5 = sshll.u32 %s344_s19, 4  ;;  %s252_s5 = int_to_ptr.vmem [resolvable:$true] %s251_s5 }
   0xa   :  { %291 = vmatpush3.bf16.msra.mxu1 %v313_v5  ;;  %v266_v26 = vld [vmem:[%s436_s6] ss:$0 sm:$0xff]  ;;  %s318_s4 = scalar_lea.vmem %s252_s5, 128  ;;  %p323_p1 = scmp.lt.s32.totalorder %s252_s5, %s252_s5 }
   0xb   :  { %p319_p0 = scmp.ne.s32.totalorder %s252_s5, %s318_s4  ;;  %p324_p2 = scmp.lt.s32.totalorder %s318_s4, %s318_s4 }
   0xc   :  { %299 = vmatpush3.bf16.msra.mxu0 %v315_v7 }
   0xd   :  { %300 = vmatprep.subr.bf16.mxu0 %v342_v1  ;;  %p325_p3 = por %p324_p2, %p323_p1 }
   0xf   :  { %p326_p4 = pnand %p325_p3, %p319_p0 }
  0x10   :  { %301 = vmatpush3.bf16.msra.mxu0 %v316_v16 }
  0x11   :  { %302 = vmatprep.subr.bf16.mxu0 %v342_v1 }
  0x14   :  { %303 = vmatpush3.bf16.msra.mxu0 %v317_v17 }
  0xd8   :  { %v83_v9 = vpop.f32.mrb[0].mxu1 }
  0xd9   :  { %v84_v10 = vadd.f32 %v259_v8, %v83_v9  ;;  %v286_v11 = vpop.f32.mrb[1].mxu1 }
  0xda   :  { %v86_v12 = vpop.f32.mrb[2].mxu1 }
  0xdb   :  { %v89_v13 = vmax.f32 %v84_v10, 0.0  ;;  %v287_v14 = vpop.f32.mrb[3].mxu1 }
  0xdd   :  { %v90_v15 = vpack.c.bf16 %v89_v13, %v89_v13 }
  0xdf   :  { %293 = vmatmul.mubr.msk.bf16.vlgmr.msra.gmra.mrb[4].mxu1 %vm114_vm2, %v90_v15 }
 0x1b2   :  { %v152_v19 = vpop.f32.mrb[4].mxu1 }
 0x1b3   :  { %v153_v20 = vadd.f32 %v262_v18, %v152_v19  ;;  %v294_v21 = vpop.f32.mrb[5].mxu1 }
 0x1b4   :  { %v155_v22 = vpop.f32.mrb[6].mxu1 }
 0x1b5   :  { %v158_v23 = vmax.f32 %v153_v20, 0.0  ;;  %v295_v24 = vpop.f32.mrb[7].mxu1 }
 0x1b7   :  { %v159_v25 = vpack.c.bf16 %v158_v23, %v158_v23 }
 0x1b9   :  { %305 = vmatmul.mubr.msk.bf16.vlgmr.msra.gmra.mrb[0].mxu0 %vm199_vm3, %v159_v25 }
 0x28c   :  { %v237_v27 = vpop.f32.mrb[0].mxu0 }
 0x28d   :  { %v238_v28 = vadd.f32 %v266_v26, %v237_v27  ;;  %v306_v29 = vpop.f32.mrb[1].mxu0 }
 0x28e   :  { %v240_v30 = vpop.f32.mrb[2].mxu0 }
 0x28f   :  { %v307_v31 = vpop.f32.mrb[3].mxu0  ;;  %244 = vst.msk [vmem:[#allocation2] sm:$0xff] %vm243_vm4, %v238_v28 }
 0x290   :  { %329 = shalt.err (!%p326_p4)
}
 0x291   :  { %s330_s6 = scalar_lea.hbm %s437_s7, 128 }
 0x292   :  { %p331_p5 = scmp.ne.s32.totalorder %s437_s7, %s330_s6  ;;  %p334_p6 = scmp.lt.u32.totalorder %s330_s6, %s437_s7 }
 0x294   :  { %p336_p7 = pnand %p334_p6, %p331_p5 }
 0x296   :  { %339 = shalt.err (!%p336_p7)
}
 0x297   :  { %254 = dma.vmem_to_hbm [thread:$0]  %s252_s5, 128, %s437_s7, [#allocation3]  }
 0x298   :  { %340 = dma.done.wait [#allocation3], 128  }
 0x299   :  { %341 = vsyncadd [#allocation3], 4294967168 }
 0x29a   :  { %258 = vsyncpa [#allocation3], 1 }

</bundles_post_ra>
